<compile_context>
chip_gen: v6e
topology: v6e:2x2x1
jax: 0.10.0
libtpu: 0.0.40
codegen_flags: <defaults>
</compile_context>

<pallas_src>
import jax
import jax.numpy as jnp
from jax.experimental import pallas as pl
from jax.experimental.pallas import tpu as pltpu

# ----------------------------- model config ---------------------------------
N_DIM = 16      # input feature dim
N_HID = 32      # hidden dim of the 4 small MLPs
N_LATENT = 16   # latent dim (coupling halves)
N_LAYER = 2     # number of (Linear + LeakyReLU) blocks per MLP
BATCH = 8
LEAKY_SLOPE = 0.05


# ------------------------------ parameter init -------------------------------
def _xavier_uniform(key, fan_in, fan_out):
    bound = jnp.sqrt(6.0 / (fan_in + fan_out))
    # Generated directly in (in, out) layout; distribution is symmetric so this
    # matches xavier_uniform_ on the torch (out, in) weight, then transposed.
    return jax.random.uniform(key, (fan_in, fan_out), jnp.float32, -bound, bound)


def _linear_bias(key, fan_in, fan_out):
    bound = 1.0 / jnp.sqrt(jnp.asarray(fan_in, jnp.float32))
    return jax.random.uniform(key, (1, fan_out), jnp.float32, -bound, bound)


def init_params(key, n_dim, n_hid, n_latent, n_layer):
    keys = iter(jax.random.split(key, 128))

    def linear(fan_in, fan_out):
        return _xavier_uniform(next(keys), fan_in, fan_out), _linear_bias(
            next(keys), fan_in, fan_out
        )

    params = {}
    params["aug_w"], params["aug_b"] = linear(n_dim, 2 * n_latent)
    params["red_w"], params["red_b"] = linear(2 * n_latent, n_latent)

    # NonLinerTransformer dims: [(L,H)] + [(H,H)]*(n_layer-1) + [(H,L)]
    dims = [(n_latent, n_hid)] + [(n_hid, n_hid)] * (n_layer - 1) + [(n_hid, n_latent)]
    for name in ("s1", "s2", "t1", "t2"):
        params[name] = [linear(fi, fo) for (fi, fo) in dims]
    return params


# --------------------------- host-side param packing -------------------------
def _block_diag(a, b):
    ra, ca = a.shape
    rb, cb = b.shape
    top = jnp.concatenate([a, jnp.zeros((ra, cb), a.dtype)], axis=1)
    bot = jnp.concatenate([jnp.zeros((rb, ca), b.dtype), b], axis=1)
    return jnp.concatenate([top, bot], axis=0)


def _fuse_pair(s_layers, t_layers, n_layer):
    """Fuse the (s, t) MLP pair (same input) into one wide MLP whose output is
    [s(x) | t(x)] along the last axis (concat first layer, block-diag rest)."""
    ws, bs = [], []
    (sw, sb), (tw, tb) = s_layers[0], t_layers[0]
    ws.append(jnp.concatenate([sw, tw], axis=1))
    bs.append(jnp.concatenate([sb, tb], axis=1))
    for i in range(1, n_layer + 1):
        (sw, sb), (tw, tb) = s_layers[i], t_layers[i]
        ws.append(_block_diag(sw, tw))
        bs.append(jnp.concatenate([sb, tb], axis=1))
    return ws, bs


def pack_params(params, n_latent, n_layer):
    """Pack every parameter into a single (rows, 128k) f32 slab.

    Returns (slab, offsets) with offsets[name] = (row, n_rows, n_cols) as
    Python ints, usable as static slice bounds inside the kernel.
    """
    L = n_latent
    entries = [
        ("aug_w1", params["aug_w"][:, :L]),
        ("aug_w2", params["aug_w"][:, L:]),
        ("aug_b1", params["aug_b"][:, :L]),
        ("aug_b2", params["aug_b"][:, L:]),
    ]
    for prefix, s_name, t_name in (("A", "s2", "t2"), ("B", "s1", "t1")):
        ws, bs = _fuse_pair(params[s_name], params[t_name], n_layer)
        for i, (w, b) in enumerate(zip(ws, bs)):
            entries.append((f"{prefix}_w{i}", w))
            entries.append((f"{prefix}_b{i}", b))
    entries.append(("red_w1", params["red_w"][:L, :]))
    entries.append(("red_w2", params["red_w"][L:, :]))
    entries.append(("red_b", params["red_b"]))

    max_w = max(int(a.shape[1]) for _, a in entries)
    cols = ((max_w + 127) // 128) * 128  # lane-dense slab width

    offsets = {}
    blocks = []
    row = 0
    for name, a in entries:
        a = jnp.asarray(a, jnp.float32)
        h, w = int(a.shape[0]), int(a.shape[1])
        ph = ((h + 7) // 8) * 8  # keep every entry 8-sublane aligned
        blocks.append(jnp.pad(a, ((0, ph - h), (0, cols - w))))
        offsets[name] = (row, h, w)
        row += ph
    slab = jnp.concatenate(blocks, axis=0)
    return slab, offsets


# ------------------------------ Pallas kernel --------------------------------
def _make_kernel(offsets, n_latent, n_layer):
    L = n_latent

    def _param(p_ref, name):
        r, h, w = offsets[name]        # static Python ints -> static slices
        return p_ref[r:r + h, 0:w]

    def kernel(x_ref, p_ref, o_ref):
        def lin(h, wname, bname):
            return (
                jnp.dot(h, _param(p_ref, wname), preferred_element_type=jnp.float32)
                + _param(p_ref, bname)
            )

        def fused_mlp(h, prefix):
            # n_layer x (Linear -> LeakyReLU(0.05)), then Linear; s/t fused wide.
            for i in range(n_layer):
                h = lin(h, f"{prefix}_w{i}", f"{prefix}_b{i}")
                h = jnp.maximum(h, LEAKY_SLOPE * h)
            return lin(h, f"{prefix}_w{n_layer}", f"{prefix}_b{n_layer}")

        x = x_ref[...]

        # augment, pre-split host-side -> no lane slice of a 2L-wide result
        u1 = lin(x, "aug_w1", "aug_b1")
        u2 = lin(x, "aug_w2", "aug_b2")

        # coupling: v1 = u1 * exp(s2(u2)) + t2(u2)
        st = fused_mlp(u2, "A")                       # (B, 2L) = [s2(u2) | t2(u2)]
        v1 = u1 * jnp.exp(st[:, :L]) + st[:, L:]

        #           v2 = u2 * exp(s1(v1)) + t1(v1)
        st = fused_mlp(v1, "B")                       # (B, 2L) = [s1(v1) | t1(v1)]
        v2 = u2 * jnp.exp(st[:, :L]) + st[:, L:]

        # reduce, split host-side -> no concat
        o_ref[...] = (
            jnp.dot(v1, _param(p_ref, "red_w1"), preferred_element_type=jnp.float32)
            + jnp.dot(v2, _param(p_ref, "red_w2"), preferred_element_type=jnp.float32)
            + _param(p_ref, "red_b")
        )

    return kernel


# -------------------------------- wrapper -------------------------------------
def build_forward(slab_shape, offsets, n_dim, n_latent, n_layer, tile_b):
    kernel = _make_kernel(offsets, n_latent, n_layer)

    @jax.jit
    def forward(x, slab):
        b = x.shape[0]
        pad = (-b) % tile_b
        if pad:
            x = jnp.concatenate([x, jnp.zeros((pad, x.shape[1]), x.dtype)], axis=0)
        bp = b + pad
        out = pl.pallas_call(
            kernel,
            out_shape=jax.ShapeDtypeStruct((bp, n_latent), jnp.float32),
            grid=(bp // tile_b,),
            in_specs=[
                pl.BlockSpec((tile_b, n_dim), lambda i: (i, 0)),     # batch tile
                pl.BlockSpec(slab_shape, lambda i: (0, 0)),          # resident weights
            ],
            out_specs=pl.BlockSpec((tile_b, n_latent), lambda i: (i, 0)),
            compiler_params=pltpu.CompilerParams(
                dimension_semantics=("parallel",),   # shards batch across v7x's 2 TCs
            ),
        )(x, slab)
        return out[:b]

    return forward


# ----------------------------- pure-JAX reference -----------------------------
def reference_forward(x, params, n_layer=N_LAYER, n_latent=N_LATENT):
    def mlp(h, layers):
        for i in range(n_layer):
            w, b = layers[i]
            h = h @ w + b
            h = jnp.where(h >= 0, h, LEAKY_SLOPE * h)
        w, b = layers[n_layer]
        return h @ w + b

    a = x @ params["aug_w"] + params["aug_b"]
    u1, u2 = a[:, :n_latent], a[:, n_latent:]
    v1 = u1 * jnp.exp(mlp(u2, params["s2"])) + mlp(u2, params["t2"])
    v2 = u2 * jnp.exp(mlp(v1, params["s1"])) + mlp(v1, params["t1"])
    z = jnp.concatenate([v1, v2], axis=-1)
    return z @ params["red_w"] + params["red_b"]


if __name__ == "__main__":
    key = jax.random.PRNGKey(0)
    k_x, k_p = jax.random.split(key)
    x = jax.random.normal(k_x, (BATCH, N_DIM), jnp.float32)
    params = init_params(k_p, N_DIM, N_HID, N_LATENT, N_LAYER)

    slab, offsets = pack_params(params, N_LATENT, N_LAYER)
    slab = jax.block_until_ready(slab)

    # Batch tile: multiple of 8 sublanes; cap so very large batches still fit
    # comfortably in the default scoped VMEM with double-buffered tiles.
    tile_b = min(((BATCH + 7) // 8) * 8, 512)

    forward = build_forward(
        tuple(slab.shape), offsets, N_DIM, N_LATENT, N_LAYER, tile_b
    )

    out = forward(x, slab)
    jax.block_until_ready(out)

    ref = reference_forward(x, params)
    assert out.shape == (BATCH, N_LATENT)
    assert jnp.allclose(out, ref, atol=1e-4, rtol=1e-4), "mismatch vs reference"
    print("KERNEL_OK")
</pallas_src>

<mosaic_0001>
module attributes {stable_mosaic.version = 11 : i64} {
  func.func @kernel(%arg0: i32, %arg1: memref<8x16xf32, #tpu.memory_space<vmem>>, %arg2: memref<424x128xf32, #tpu.memory_space<vmem>>, %arg3: memref<8x16xf32, #tpu.memory_space<vmem>>) attributes {dimension_semantics = [#tpu.dimension_semantics<parallel>], iteration_bounds = array<i64: 1>, scalar_prefetch = 0 : i64, scratch_operands = 0 : i64, tpu.core_type = #tpu.core_type<tc>, window_params = [{transform_indices = @transform_0, window_bounds = array<i64: 8, 16>}, {pipeline_mode = #tpu.pipeline_mode<synchronous>, transform_indices = @transform_1, window_bounds = array<i64: 424, 128>}, {transform_indices = @transform_2, window_bounds = array<i64: 8, 16>}]} {
    %c0 = arith.constant 0 : index
    %c0_0 = arith.constant 0 : index
    %0 = vector.load %arg1[%c0, %c0_0] : memref<8x16xf32, #tpu.memory_space<vmem>>, vector<8x16xf32>
    %c0_1 = arith.constant 0 : index
    %c0_2 = arith.constant 0 : index
    %1 = vector.load %arg2[%c0_1, %c0_2] : memref<424x128xf32, #tpu.memory_space<vmem>>, vector<16x16xf32>
    %cst = arith.constant dense<0.000000e+00> : vector<8x16xf32>
    %2 = tpu.matmul %0, %1, %cst {dimension_numbers = #tpu.dot_dimension_numbers<[1], [0], [0], [1], [0, 0, 1, 1], [], []>} : vector<8x16xf32>, vector<16x16xf32>, vector<8x16xf32> -> vector<8x16xf32>
    %c32 = arith.constant 32 : index
    %c0_3 = arith.constant 0 : index
    %3 = vector.load %arg2[%c32, %c0_3] : memref<424x128xf32, #tpu.memory_space<vmem>>, vector<1x16xf32>
    %4 = vector.broadcast %3 : vector<1x16xf32> to vector<8x16xf32>
    %5 = arith.addf %2, %4 : vector<8x16xf32>
    %c16 = arith.constant 16 : index
    %c0_4 = arith.constant 0 : index
    %6 = vector.load %arg2[%c16, %c0_4] : memref<424x128xf32, #tpu.memory_space<vmem>>, vector<16x16xf32>
    %cst_5 = arith.constant dense<0.000000e+00> : vector<8x16xf32>
    %7 = tpu.matmul %0, %6, %cst_5 {dimension_numbers = #tpu.dot_dimension_numbers<[1], [0], [0], [1], [0, 0, 1, 1], [], []>} : vector<8x16xf32>, vector<16x16xf32>, vector<8x16xf32> -> vector<8x16xf32>
    %c40 = arith.constant 40 : index
    %c0_6 = arith.constant 0 : index
    %8 = vector.load %arg2[%c40, %c0_6] : memref<424x128xf32, #tpu.memory_space<vmem>>, vector<1x16xf32>
    %9 = vector.broadcast %8 : vector<1x16xf32> to vector<8x16xf32>
    %10 = arith.addf %7, %9 : vector<8x16xf32>
    %c48 = arith.constant 48 : index
    %c0_7 = arith.constant 0 : index
    %11 = vector.load %arg2[%c48, %c0_7] : memref<424x128xf32, #tpu.memory_space<vmem>>, vector<16x64xf32>
    %cst_8 = arith.constant dense<0.000000e+00> : vector<8x64xf32>
    %12 = tpu.matmul %10, %11, %cst_8 {dimension_numbers = #tpu.dot_dimension_numbers<[1], [0], [0], [1], [0, 0, 1, 1], [], []>} : vector<8x16xf32>, vector<16x64xf32>, vector<8x64xf32> -> vector<8x64xf32>
    %c64 = arith.constant 64 : index
    %c0_9 = arith.constant 0 : index
    %13 = vector.load %arg2[%c64, %c0_9] : memref<424x128xf32, #tpu.memory_space<vmem>>, vector<1x64xf32>
    %14 = vector.broadcast %13 : vector<1x64xf32> to vector<8x64xf32>
    %15 = arith.addf %12, %14 : vector<8x64xf32>
    %cst_10 = arith.constant 5.000000e-02 : f32
    %16 = vector.broadcast %cst_10 : f32 to vector<8x64xf32>
    %17 = arith.mulf %16, %15 : vector<8x64xf32>
    %18 = arith.maximumf %15, %17 : vector<8x64xf32>
    %c72 = arith.constant 72 : index
    %c0_11 = arith.constant 0 : index
    %19 = vector.load %arg2[%c72, %c0_11] : memref<424x128xf32, #tpu.memory_space<vmem>>, vector<64x64xf32>
    %cst_12 = arith.constant dense<0.000000e+00> : vector<8x64xf32>
    %20 = tpu.matmul %18, %19, %cst_12 {dimension_numbers = #tpu.dot_dimension_numbers<[1], [0], [0], [1], [0, 0, 1, 1], [], []>} : vector<8x64xf32>, vector<64x64xf32>, vector<8x64xf32> -> vector<8x64xf32>
    %c136 = arith.constant 136 : index
    %c0_13 = arith.constant 0 : index
    %21 = vector.load %arg2[%c136, %c0_13] : memref<424x128xf32, #tpu.memory_space<vmem>>, vector<1x64xf32>
    %22 = vector.broadcast %21 : vector<1x64xf32> to vector<8x64xf32>
    %23 = arith.addf %20, %22 : vector<8x64xf32>
    %cst_14 = arith.constant 5.000000e-02 : f32
    %24 = vector.broadcast %cst_14 : f32 to vector<8x64xf32>
    %25 = arith.mulf %24, %23 : vector<8x64xf32>
    %26 = arith.maximumf %23, %25 : vector<8x64xf32>
    %c144 = arith.constant 144 : index
    %c0_15 = arith.constant 0 : index
    %27 = vector.load %arg2[%c144, %c0_15] : memref<424x128xf32, #tpu.memory_space<vmem>>, vector<64x32xf32>
    %cst_16 = arith.constant dense<0.000000e+00> : vector<8x32xf32>
    %28 = tpu.matmul %26, %27, %cst_16 {dimension_numbers = #tpu.dot_dimension_numbers<[1], [0], [0], [1], [0, 0, 1, 1], [], []>} : vector<8x64xf32>, vector<64x32xf32>, vector<8x32xf32> -> vector<8x32xf32>
    %c208 = arith.constant 208 : index
    %c0_17 = arith.constant 0 : index
    %29 = vector.load %arg2[%c208, %c0_17] : memref<424x128xf32, #tpu.memory_space<vmem>>, vector<1x32xf32>
    %30 = vector.broadcast %29 : vector<1x32xf32> to vector<8x32xf32>
    %31 = arith.addf %28, %30 : vector<8x32xf32>
    %32 = vector.extract_strided_slice %31 {offsets = [0, 0], sizes = [8, 16], strides = [1, 1]} : vector<8x32xf32> to vector<8x16xf32>
    %33 = math.exp %32 : vector<8x16xf32>
    %34 = arith.mulf %5, %33 : vector<8x16xf32>
    %35 = vector.extract_strided_slice %31 {offsets = [0, 16], sizes = [8, 16], strides = [1, 1]} : vector<8x32xf32> to vector<8x16xf32>
    %36 = arith.addf %34, %35 : vector<8x16xf32>
    %c216 = arith.constant 216 : index
    %c0_18 = arith.constant 0 : index
    %37 = vector.load %arg2[%c216, %c0_18] : memref<424x128xf32, #tpu.memory_space<vmem>>, vector<16x64xf32>
    %cst_19 = arith.constant dense<0.000000e+00> : vector<8x64xf32>
    %38 = tpu.matmul %36, %37, %cst_19 {dimension_numbers = #tpu.dot_dimension_numbers<[1], [0], [0], [1], [0, 0, 1, 1], [], []>} : vector<8x16xf32>, vector<16x64xf32>, vector<8x64xf32> -> vector<8x64xf32>
    %c232 = arith.constant 232 : index
    %c0_20 = arith.constant 0 : index
    %39 = vector.load %arg2[%c232, %c0_20] : memref<424x128xf32, #tpu.memory_space<vmem>>, vector<1x64xf32>
    %40 = vector.broadcast %39 : vector<1x64xf32> to vector<8x64xf32>
    %41 = arith.addf %38, %40 : vector<8x64xf32>
    %cst_21 = arith.constant 5.000000e-02 : f32
    %42 = vector.broadcast %cst_21 : f32 to vector<8x64xf32>
    %43 = arith.mulf %42, %41 : vector<8x64xf32>
    %44 = arith.maximumf %41, %43 : vector<8x64xf32>
    %c240 = arith.constant 240 : index
    %c0_22 = arith.constant 0 : index
    %45 = vector.load %arg2[%c240, %c0_22] : memref<424x128xf32, #tpu.memory_space<vmem>>, vector<64x64xf32>
    %cst_23 = arith.constant dense<0.000000e+00> : vector<8x64xf32>
    %46 = tpu.matmul %44, %45, %cst_23 {dimension_numbers = #tpu.dot_dimension_numbers<[1], [0], [0], [1], [0, 0, 1, 1], [], []>} : vector<8x64xf32>, vector<64x64xf32>, vector<8x64xf32> -> vector<8x64xf32>
    %c304 = arith.constant 304 : index
    %c0_24 = arith.constant 0 : index
    %47 = vector.load %arg2[%c304, %c0_24] : memref<424x128xf32, #tpu.memory_space<vmem>>, vector<1x64xf32>
    %48 = vector.broadcast %47 : vector<1x64xf32> to vector<8x64xf32>
    %49 = arith.addf %46, %48 : vector<8x64xf32>
    %cst_25 = arith.constant 5.000000e-02 : f32
    %50 = vector.broadcast %cst_25 : f32 to vector<8x64xf32>
    %51 = arith.mulf %50, %49 : vector<8x64xf32>
    %52 = arith.maximumf %49, %51 : vector<8x64xf32>
    %c312 = arith.constant 312 : index
    %c0_26 = arith.constant 0 : index
    %53 = vector.load %arg2[%c312, %c0_26] : memref<424x128xf32, #tpu.memory_space<vmem>>, vector<64x32xf32>
    %cst_27 = arith.constant dense<0.000000e+00> : vector<8x32xf32>
    %54 = tpu.matmul %52, %53, %cst_27 {dimension_numbers = #tpu.dot_dimension_numbers<[1], [0], [0], [1], [0, 0, 1, 1], [], []>} : vector<8x64xf32>, vector<64x32xf32>, vector<8x32xf32> -> vector<8x32xf32>
    %c376 = arith.constant 376 : index
    %c0_28 = arith.constant 0 : index
    %55 = vector.load %arg2[%c376, %c0_28] : memref<424x128xf32, #tpu.memory_space<vmem>>, vector<1x32xf32>
    %56 = vector.broadcast %55 : vector<1x32xf32> to vector<8x32xf32>
    %57 = arith.addf %54, %56 : vector<8x32xf32>
    %58 = vector.extract_strided_slice %57 {offsets = [0, 0], sizes = [8, 16], strides = [1, 1]} : vector<8x32xf32> to vector<8x16xf32>
    %59 = math.exp %58 : vector<8x16xf32>
    %60 = arith.mulf %10, %59 : vector<8x16xf32>
    %61 = vector.extract_strided_slice %57 {offsets = [0, 16], sizes = [8, 16], strides = [1, 1]} : vector<8x32xf32> to vector<8x16xf32>
    %62 = arith.addf %60, %61 : vector<8x16xf32>
    %c384 = arith.constant 384 : index
    %c0_29 = arith.constant 0 : index
    %63 = vector.load %arg2[%c384, %c0_29] : memref<424x128xf32, #tpu.memory_space<vmem>>, vector<16x16xf32>
    %cst_30 = arith.constant dense<0.000000e+00> : vector<8x16xf32>
    %64 = tpu.matmul %36, %63, %cst_30 {dimension_numbers = #tpu.dot_dimension_numbers<[1], [0], [0], [1], [0, 0, 1, 1], [], []>} : vector<8x16xf32>, vector<16x16xf32>, vector<8x16xf32> -> vector<8x16xf32>
    %c400 = arith.constant 400 : index
    %c0_31 = arith.constant 0 : index
    %65 = vector.load %arg2[%c400, %c0_31] : memref<424x128xf32, #tpu.memory_space<vmem>>, vector<16x16xf32>
    %cst_32 = arith.constant dense<0.000000e+00> : vector<8x16xf32>
    %66 = tpu.matmul %62, %65, %cst_32 {dimension_numbers = #tpu.dot_dimension_numbers<[1], [0], [0], [1], [0, 0, 1, 1], [], []>} : vector<8x16xf32>, vector<16x16xf32>, vector<8x16xf32> -> vector<8x16xf32>
    %67 = arith.addf %64, %66 : vector<8x16xf32>
    %c416 = arith.constant 416 : index
    %c0_33 = arith.constant 0 : index
    %68 = vector.load %arg2[%c416, %c0_33] : memref<424x128xf32, #tpu.memory_space<vmem>>, vector<1x16xf32>
    %69 = vector.broadcast %68 : vector<1x16xf32> to vector<8x16xf32>
    %70 = arith.addf %67, %69 : vector<8x16xf32>
    %c0_34 = arith.constant 0 : index
    %c0_35 = arith.constant 0 : index
    %71 = vector.load %arg3[%c0_34, %c0_35] : memref<8x16xf32, #tpu.memory_space<vmem>>, vector<8x16xf32>
    tpu.vector_store %arg3[%c0_34, %c0_35], %70 {strides = array<i32>} : memref<8x16xf32, #tpu.memory_space<vmem>>, vector<8x16xf32>,
    return
  }
  func.func @transform_0(%arg0: i32) -> (i32, i32) {
    %c0_i32 = arith.constant 0 : i32
    %c0_i32_0 = arith.constant 0 : i32
    return %arg0, %c0_i32 : i32, i32
  }
  func.func @transform_1(%arg0: i32) -> (i32, i32) {
    %c0_i32 = arith.constant 0 : i32
    %c0_i32_0 = arith.constant 0 : i32
    %c0_i32_1 = arith.constant 0 : i32
    return %c0_i32, %c0_i32_0 : i32, i32
  }
  func.func @transform_2(%arg0: i32) -> (i32, i32) {
    %c0_i32 = arith.constant 0 : i32
    %c0_i32_0 = arith.constant 0 : i32
    return %arg0, %c0_i32 : i32, i32
  }
}

</mosaic_0001>

<bundles_post_ra>
// kernel: forward.1
= control target key start
LH: loop header
LB: loop body
LE: loop exit
PB: predicated region body
PF: predicated region fallthrough
CT: control target
= control target key end

     0   :  { %7 = vsyncpa [#allocation3], 0  ;;  %s1281_s0 = inlined_call_operand.hbm [shape: f32[8,16], index: 0, kind: input, shape index: {}]   ;;  %s1282_s1 = inlined_call_operand.hbm [shape: f32[424,128], index: 1, kind: input, shape index: {}]   ;;  %s1283_s2 = inlined_call_operand.hbm [shape: f32[8,16], index: 2, kind: output, shape index: {}]  }
   0x1   :  { %8 = vsyncpa [#allocation6], 0 }
   0x2   :  { %9 = vsyncpa [#allocation4], 0  ;;  %s1165_s9 = smov [#allocation2]   ;;  %s1166_s11 = smov [#allocation5]  }
   0x3   :  { %s16_s10 = sshll.u32 %s1165_s9, 4  ;;  %s25_s12 = sshll.u32 %s1166_s11, 4  ;;  %s17_s10 = int_to_ptr.vmem [resolvable:$true] %s16_s10  ;;  %s26_s12 = int_to_ptr.vmem [resolvable:$true] %s25_s12 }
   0x4   :  { %s1107_s13 = scalar_lea.vmem %s17_s10, 128  ;;  %p1112_p1 = scmp.lt.s32.totalorder %s17_s10, %s17_s10 }
   0x5   :  { %p1108_p0 = scmp.ne.s32.totalorder %s17_s10, %s1107_s13  ;;  %p1113_p2 = scmp.lt.s32.totalorder %s1107_s13, %s1107_s13 }
   0x7   :  { %p1114_p3 = por %p1113_p2, %p1112_p1 }
   0x9   :  { %p1115_p4 = pnand %p1114_p3, %p1108_p0 }
   0xb   :  { %1118 = shalt.err (!%p1115_p4)
}
   0xc   :  { %19 = dma.hbm_to_vmem [thread:$0]  %s1281_s0, 128, %s17_s10, [#allocation3]  }
   0xd   :  { %s1127_s16 = scalar_lea.vmem %s26_s12, 6784  ;;  %p1132_p6 = scmp.lt.s32.totalorder %s26_s12, %s26_s12 }
   0xe   :  { %p1128_p5 = scmp.ne.s32.totalorder %s26_s12, %s1127_s16  ;;  %p1133_p7 = scmp.lt.s32.totalorder %s1127_s16, %s1127_s16 }
  0x10   :  { %p1134_p8 = por %p1133_p7, %p1132_p6 }
  0x12   :  { %p1135_p9 = pnand %p1134_p8, %p1128_p5 }
  0x14   :  { %1138 = shalt.err (!%p1135_p9)
}
  0x15   :  { %s1167_s17 = smov 128   ;;  %s1168_s18 = smov 8  }
  0x16   :  { %31 = dma.hbm_to_vmem [thread:$0]  %s1282_s1, 6784, %s26_s12, [#allocation6], %s1167_s17, %s1167_s17, %s1168_s18  }
  0x17   :  { %1159 = dma.done.wait [#allocation3], 128  }
  0x18   :  { %1160 = vsyncadd [#allocation3], 4294967168 }
  0x19   :  { %1161 = dma.done.wait [#allocation6], 6784  }
  0x1a   :  { %1162 = vsyncadd [#allocation6], 4294960512  ;;  %v1169_v0 = vmov 0.0   ;;  %vm1170_vm0 = vmmov 0   ;;  %v121_v1 = vld [vmem:[#allocation5 + $0x18] sm:$0xff]  ;;  %v120_v2 = vld [vmem:[#allocation5 + $0x10] sm:$0xff] }
  0x1b   :  { %976 = vmatprep.subr.mxu1 %v1169_v0  ;;  %980 = vmatprep.mubr.msk.f32.mxu1 %vm1170_vm0, %v1169_v0  ;;  %v38_v3 = vld [vmem:[#allocation2] sm:$0xff]  ;;  %vm46_vm1 = vcmask 130048   ;;  %v40_v4 = vld [vmem:[#allocation5 + $0x8] sm:$0xff]  ;;  %v39_v5 = vld [vmem:[#allocation5] sm:$0xff]  ;;  %vm292_vm2 = vcmask 523264   ;;  %s1171_s0 = smov 112  }
  0x1c   :  { %969 = vmatprep.subr.mxu0 %v1169_v0  ;;  %973 = vmatprep.mubr.msk.f32.mxu0 %vm1170_vm0, %v1169_v0  ;;  %v198_v6 = vld [vmem:[#allocation5 + $0x38] sm:$0xff]  ;;  %v197_v7 = vld [vmem:[#allocation5 + $0x30] sm:$0xff]  ;;  %v286_v8 = vld [vmem:[#allocation5 + $0x80] sm:$0xff]  ;;  %s1172_s1 = smov [#allocation7]  }
  0x1d   :  { %977 = vmatpush3.msra.mxu1 %v121_v1  ;;  %970 = vmatpush3.msra.mxu0 %v40_v4  ;;  %v285_v9 = vld [vmem:[#allocation5 + $0x78] sm:$0xff]  ;;  %v284_v10 = vld [vmem:[#allocation5 + $0x70] sm:$0xff]  ;;  %v283_v11 = vld [vmem:[#allocation5 + $0x68] sm:$0xff]  ;;  %s886_s21 = sshll.u32 %s1172_s1, 4  ;;  %s887_s21 = int_to_ptr.vmem [resolvable:$true] %s886_s21 }
  0x1e   :  { %978 = vmatprep.subr.mxu1 %v1169_v0  ;;  %971 = vmatprep.subr.mxu0 %v1169_v0  ;;  %v898_v12 = vld [vmem:[#allocation5 + $0x28] ss:$0 sm:$0xff]  ;;  %v282_v18 = vld [vmem:[#allocation5 + $0x60] sm:$0xff]  ;;  %v281_v19 = vld [vmem:[#allocation5 + $0x58] sm:$0xff]  ;;  %s1139_s22 = scalar_lea.vmem %s887_s21, 128  ;;  %p1144_p11 = scmp.lt.s32.totalorder %s887_s21, %s887_s21 }
  0x1f   :  { %979 = vmatpush3.msra.mxu1 %v120_v2  ;;  %972 = vmatpush3.msra.mxu0 %v39_v5  ;;  %v280_v20 = vld [vmem:[#allocation5 + $0x50] sm:$0xff]  ;;  %v279_v21 = vld [vmem:[#allocation5 + $0x48] sm:$0xff]  ;;  %v374_v23 = vld [vmem:[#allocation5 + $0xc0] sm:$0xff]  ;;  %p1140_p10 = scmp.ne.s32.totalorder %s887_s21, %s1139_s22  ;;  %p1145_p12 = scmp.lt.s32.totalorder %s1139_s22, %s1139_s22 }
  0x20   :  { %981 = vmatmul.mubr.msk.f32.vlgmr.msra.gmra.mxu1 %vm46_vm1, %v38_v3  ;;  %974 = vmatmul.mubr.msk.f32.vlgmr.msra.gmra.mxu0 %vm46_vm1, %v38_v3  ;;  %v375_v22 = vld [vmem:[#allocation5 + $0xc8] sm:$0xff]  ;;  %v373_v24 = vld [vmem:[#allocation5 + $0xb8] sm:$0xff]  ;;  %v372_v25 = vld [vmem:[#allocation5 + $0xb0] sm:$0xff] }
  0x21   :  { %983 = vmatprep.subr.mxu0 %v1169_v0  ;;  %987 = vmatprep.mubr.msk.f32.mxu0 %vm1170_vm0, %v1169_v0  ;;  %v900_v26 = vld [vmem:[#allocation5 + $0x40] ss:$0 sm:$0xff]  ;;  %v371_v32 = vld [vmem:[#allocation5 + $0xa8] sm:$0xff]  ;;  %v369_v34 = vld [vmem:[#allocation5 + $0x98] sm:$0xff]  ;;  %p1146_p13 = por %p1145_p12, %p1144_p11 }
  0x22   :  { %984 = vmatpush3.msra.mxu0 %v198_v6  ;;  %990 = vmatprep.subr.mxu1 %v1169_v0  ;;  %v370_v33 = vld [vmem:[#allocation5 + $0xa0] sm:$0xff]  ;;  %v368_v35 = vld [vmem:[#allocation5 + $0x90] sm:$0xff]  ;;  %v902_v36 = vld [vmem:[#allocation5 + $0x88] ss:$0 sm:$0xff] }
  0x23   :  { %985 = vmatprep.subr.mxu0 %v1169_v0  ;;  %1006 = vmatprep.mubr.msk.f32.mxu1 %vm1170_vm0, %v1169_v0  ;;  %v463_v42 = vld [vmem:[#allocation5 + $0xe0] sm:$0xff]  ;;  %v462_v43 = vld [vmem:[#allocation5 + $0xd8] sm:$0xff]  ;;  %v551_v44 = vld [vmem:[#allocation5 + $0x128] sm:$0xff]  ;;  %p1147_p0 = pnand %p1146_p13, %p1140_p10 }
  0x24   :  { %986 = vmatpush3.msra.mxu0 %v197_v7  ;;  %991 = vmatpush3.msra.mxu1 %v286_v8  ;;  %v550_v45 = vld [vmem:[#allocation5 + $0x120] sm:$0xff]  ;;  %v549_v46 = vld [vmem:[#allocation5 + $0x118] sm:$0xff]  ;;  %v548_v47 = vld [vmem:[#allocation5 + $0x110] sm:$0xff] }
  0x25   :  { %1009 = vmatprep.subr.mxu0 %v1169_v0  ;;  %992 = vmatprep.subr.mxu1 %v1169_v0  ;;  %v904_v48 = vld [vmem:[#allocation5 + $0xd0] ss:$0 sm:$0xff]  ;;  %v896_v53 = vld [vmem:[#allocation5 + $0x20] ss:$0 sm:$0xff]  ;;  %v547_v59 = vld [vmem:[#allocation5 + $0x108] sm:$0xff] }
  0x26   :  { %993 = vmatpush3.msra.mxu1 %v285_v9  ;;  %v546_v60 = vld [vmem:[#allocation5 + $0x100] sm:$0xff]  ;;  %v545_v61 = vld [vmem:[#allocation5 + $0xf8] sm:$0xff]  ;;  %v544_v62 = vld [vmem:[#allocation5 + $0xf0] sm:$0xff] }
  0x27   :  { %994 = vmatprep.subr.mxu1 %v1169_v0  ;;  %v639_v63 = vld [vmem:[#allocation5 + $0x170] sm:$0xff]  ;;  %v638_v1 = vld [vmem:[#allocation5 + $0x168] sm:$0xff]  ;;  %v637_v2 = vld [vmem:[#allocation5 + $0x160] sm:$0xff] }
  0x28   :  { %995 = vmatpush3.msra.mxu1 %v284_v10  ;;  %v636_v3 = vld [vmem:[#allocation5 + $0x158] sm:$0xff]  ;;  %v906_v4 = vld [vmem:[#allocation5 + $0xe8] ss:$0 sm:$0xff]  ;;  %v635_v10 = vld [vmem:[#allocation5 + $0x150] sm:$0xff] }
  0x29   :  { %996 = vmatprep.subr.mxu1 %v1169_v0 }
  0x2a   :  { %997 = vmatpush3.msra.mxu1 %v283_v11  ;;  %v634_v11 = vld [vmem:[#allocation5 + $0x148] sm:$0xff] }
  0x2b   :  { %998 = vmatprep.subr.mxu1 %v1169_v0 }
  0x2c   :  { %999 = vmatpush3.msra.mxu1 %v282_v18 }
  0x2d   :  { %1000 = vmatprep.subr.mxu1 %v1169_v0 }
  0x2e   :  { %1001 = vmatpush3.msra.mxu1 %v281_v19 }
  0x2f   :  { %1002 = vmatprep.subr.mxu1 %v1169_v0 }
  0x30   :  { %1003 = vmatpush3.msra.mxu1 %v280_v20 }
  0x31   :  { %1004 = vmatprep.subr.mxu1 %v1169_v0 }
  0x32   :  { %1005 = vmatpush3.msra.mxu1 %v279_v21  ;;  %v727_v21 = vld [vmem:[#allocation5 + $0x188] sm:$0xff] }
  0x33   :  { %1028 = vmatprep.subr.mxu1 %v1169_v0 }
  0xe0   :  { %v193_v13 = vpop.f32.mrf.mxu1  ;;  %v1218_v15 = vpop.f32.mrf.mxu0 }
  0xe1   :  { %v1216_v14 = vadd.f32 %v898_v12, %v193_v13  ;;  %v117_v54 = vadd.f32 %v896_v53, %v1218_v15  ;;  %v633_v12 = vld [vmem:[#allocation5 + $0x140] sm:$0xff]  ;;  %v632_v13 = vld [vmem:[#allocation5 + $0x138] sm:$0xff]  ;;  %v908_v15 = vld [vmem:[#allocation5 + $0x130] ss:$0 sm:$0xff] }
  0xe2   :  { %v982_v16 = vpop.f32.mrf.mxu1  ;;  %v975_v17 = vpop.f32.mrf.mxu0 }
  0xe3   :  { %988 = vmatmul.mubr.msk.f32.vlgmr.msra.gmra.mxu0 %vm46_vm1, %v1216_v14 }
  0xe4   :  { %1025 = vmatprep.mubr.msk.f32.mxu0 %vm1170_vm0, %v1169_v0  ;;  %1010 = vmatpush3.msra.mxu0 %v375_v22  ;;  %v726_v22 = vld [vmem:[#allocation5 + $0x180] sm:$0xff] }
  0xe5   :  { %1011 = vmatprep.subr.mxu0 %v1169_v0 }
  0xe6   :  { %1012 = vmatpush3.msra.mxu0 %v374_v23  ;;  %v729_v23 = vld [vmem:[#allocation5 + $0x198] sm:$0xff] }
  0xe7   :  { %1013 = vmatprep.subr.mxu0 %v1169_v0 }
  0xe8   :  { %1014 = vmatpush3.msra.mxu0 %v373_v24  ;;  %v728_v24 = vld [vmem:[#allocation5 + $0x190] sm:$0xff] }
  0xe9   :  { %1015 = vmatprep.subr.mxu0 %v1169_v0 }
  0xea   :  { %1016 = vmatpush3.msra.mxu0 %v372_v25  ;;  %v910_v25 = vld [vmem:[#allocation5 + $0x178] ss:$0 sm:$0xff] }
  0xeb   :  { %1017 = vmatprep.subr.mxu0 %v1169_v0 }
  0xec   :  { %1018 = vmatpush3.msra.mxu0 %v371_v32 }
  0xed   :  { %1019 = vmatprep.subr.mxu0 %v1169_v0 }
  0xee   :  { %1020 = vmatpush3.msra.mxu0 %v370_v33 }
  0xef   :  { %1021 = vmatprep.subr.mxu0 %v1169_v0 }
  0xf0   :  { %1022 = vmatpush3.msra.mxu0 %v369_v34 }
  0xf1   :  { %1023 = vmatprep.subr.mxu0 %v1169_v0 }
  0xf2   :  { %1024 = vmatpush3.msra.mxu0 %v368_v35 }
  0xf3   :  { %1035 = vmatprep.subr.mxu0 %v1169_v0 }
 0x1a3   :  { %v273_v27 = vpop.f32.mrf.mxu0 }
 0x1a4   :  { %v274_v28 = vadd.f32 %v900_v26, %v273_v27 }
 0x1a5   :  { %v989_v29 = vpop.f32.mrf.mxu0 }
 0x1a6   :  { %v277_v30 = vmul.f32 0.05, %v274_v28 }
 0x1a8   :  { %v278_v31 = vmax.f32 %v274_v28, %v277_v30 }
 0x1aa   :  { %1007 = vmatmul.mubr.msk.f32.vlgmr.msra.gmra.mxu1 %vm292_vm2, %v278_v31 }
 0x1ab   :  { %1032 = vmatprep.mubr.msk.f32.mxu1 %vm1170_vm0, %v1169_v0  ;;  %1029 = vmatpush3.msra.mxu1 %v463_v42 }
 0x1ac   :  { %1030 = vmatprep.subr.mxu1 %v1169_v0 }
 0x1ad   :  { %1031 = vmatpush3.msra.mxu1 %v462_v43 }
 0x1ae   :  { %1054 = vmatprep.subr.mxu1 %v1169_v0 }
 0x26a   :  { %v362_v37 = vpop.f32.mrf.mxu1 }
 0x26b   :  { %v363_v38 = vadd.f32 %v902_v36, %v362_v37  ;;  %v914_v36 = vld [vmem:[#allocation5 + $0x1a0] ss:$0 sm:$0xff] }
 0x26c   :  { %v1008_v39 = vpop.f32.mrf.mxu1 }
 0x26d   :  { %v366_v40 = vmul.f32 0.05, %v363_v38 }
 0x26f   :  { %v367_v41 = vmax.f32 %v363_v38, %v366_v40 }
 0x271   :  { %1026 = vmatmul.mubr.msk.f32.vlgmr.msra.gmra.mxu0 %vm292_vm2, %v367_v41 }
 0x272   :  { %1051 = vmatprep.mubr.msk.f32.mxu0 %vm1170_vm0, %v1169_v0  ;;  %1036 = vmatpush3.msra.mxu0 %v551_v44 }
 0x273   :  { %1037 = vmatprep.subr.mxu0 %v1169_v0 }
 0x274   :  { %1038 = vmatpush3.msra.mxu0 %v550_v45 }
 0x275   :  { %1039 = vmatprep.subr.mxu0 %v1169_v0 }
 0x276   :  { %1040 = vmatpush3.msra.mxu0 %v549_v46 }
 0x277   :  { %1041 = vmatprep.subr.mxu0 %v1169_v0 }
 0x278   :  { %1042 = vmatpush3.msra.mxu0 %v548_v47 }
 0x279   :  { %1043 = vmatprep.subr.mxu0 %v1169_v0 }
 0x27a   :  { %1044 = vmatpush3.msra.mxu0 %v547_v59 }
 0x27b   :  { %1045 = vmatprep.subr.mxu0 %v1169_v0 }
 0x27c   :  { %1046 = vmatpush3.msra.mxu0 %v546_v60 }
 0x27d   :  { %1047 = vmatprep.subr.mxu0 %v1169_v0 }
 0x27e   :  { %1048 = vmatpush3.msra.mxu0 %v545_v61 }
 0x27f   :  { %1049 = vmatprep.subr.mxu0 %v1169_v0 }
 0x280   :  { %1050 = vmatpush3.msra.mxu0 %v544_v62 }
 0x281   :  { %1073 = vmatprep.subr.mxu0 %v1169_v0 }
 0x331   :  { %v450_v49 = vpop.f32.mrf.mxu0 }
 0x332   :  { %v451_v50 = vadd.f32 %v904_v48, %v450_v49 }
 0x333   :  { %v1027_v51 = vpop.f32.mrf.mxu0 }
 0x334   :  { %v454_v52 = vmul.f32 1.442695, %v451_v50  ;;  %458 = vrot.lane.b32.xlu0 %v451_v50, %s1171_s0 }
 0x336   :  { %1095 = vpow2.f32 %v454_v52 }
 0x343   :  { %v1096_v55 = vpop.eup %1095 }
 0x344   :  { %v456_v56 = vmul.f32 %v1096_v55, %v117_v54 }
 0x3a6   :  { %v459_v57 = vpop.permute.xlu0 %458 }
 0x3a7   :  { %v461_v58 = vadd.f32 %v459_v57, %v456_v56 }
 0x3a9   :  { %1033 = vmatmul.mubr.msk.f32.vlgmr.msra.gmra.mxu1 %vm46_vm1, %v461_v58 }
 0x3aa   :  { %1070 = vmatprep.mubr.msk.f32.mxu1 %vm1170_vm0, %v1169_v0  ;;  %1055 = vmatpush3.msra.mxu1 %v639_v63 }
 0x3ab   :  { %1056 = vmatprep.subr.mxu1 %v1169_v0 }
 0x3ac   :  { %1057 = vmatpush3.msra.mxu1 %v638_v1 }
 0x3ad   :  { %1058 = vmatprep.subr.mxu1 %v1169_v0 }
 0x3ae   :  { %1059 = vmatpush3.msra.mxu1 %v637_v2 }
 0x3af   :  { %1060 = vmatprep.subr.mxu1 %v1169_v0 }
 0x3b0   :  { %1061 = vmatpush3.msra.mxu1 %v636_v3 }
 0x3b1   :  { %1062 = vmatprep.subr.mxu1 %v1169_v0 }
 0x3b2   :  { %1063 = vmatpush3.msra.mxu1 %v635_v10 }
 0x3b3   :  { %1064 = vmatprep.subr.mxu1 %v1169_v0 }
 0x3b4   :  { %1065 = vmatpush3.msra.mxu1 %v634_v11 }
 0x3b5   :  { %1066 = vmatprep.subr.mxu1 %v1169_v0 }
 0x3b6   :  { %1067 = vmatpush3.msra.mxu1 %v633_v12 }
 0x3b7   :  { %1068 = vmatprep.subr.mxu1 %v1169_v0 }
 0x3b8   :  { %1069 = vmatpush3.msra.mxu1 %v632_v13 }
 0x3b9   :  { %1080 = vmatprep.subr.mxu1 %v1169_v0 }
 0x469   :  { %v538_v5 = vpop.f32.mrf.mxu1 }
 0x46a   :  { %v539_v6 = vadd.f32 %v906_v4, %v538_v5 }
 0x46b   :  { %v1034_v7 = vpop.f32.mrf.mxu1 }
 0x46c   :  { %v542_v8 = vmul.f32 0.05, %v539_v6 }
 0x46e   :  { %v543_v9 = vmax.f32 %v539_v6, %v542_v8 }
 0x470   :  { %1052 = vmatmul.mubr.msk.f32.vlgmr.msra.gmra.mxu0 %vm292_vm2, %v543_v9 }
 0x471   :  { %1077 = vmatprep.mubr.msk.f32.mxu0 %vm1170_vm0, %v1169_v0  ;;  %1074 = vmatpush3.msra.mxu0 %v729_v23 }
 0x472   :  { %1075 = vmatprep.subr.mxu0 %v1169_v0 }
 0x473   :  { %1076 = vmatpush3.msra.mxu0 %v728_v24 }
 0x530   :  { %v626_v16 = vpop.f32.mrf.mxu0 }
 0x531   :  { %v627_v17 = vadd.f32 %v908_v15, %v626_v16 }
 0x532   :  { %v1053_v18 = vpop.f32.mrf.mxu0 }
 0x533   :  { %v630_v19 = vmul.f32 0.05, %v627_v17 }
 0x535   :  { %v631_v20 = vmax.f32 %v627_v17, %v630_v19 }
 0x537   :  { %1071 = vmatmul.mubr.msk.f32.vlgmr.msra.gmra.mxu1 %vm292_vm2, %v631_v20 }
 0x538   :  { %1081 = vmatpush3.msra.mxu1 %v727_v21  ;;  %1084 = vmatprep.mubr.msk.f32.mxu1 %vm1170_vm0, %v1169_v0 }
 0x539   :  { %1082 = vmatprep.subr.mxu1 %v1169_v0 }
 0x53a   :  { %1083 = vmatpush3.msra.mxu1 %v726_v22 }
 0x53b   :  { %1085 = vmatmul.mubr.msk.f32.vlgmr.msra.gmra.mxu1 %vm46_vm1, %v461_v58 }
 0x5f7   :  { %v714_v26 = vpop.f32.mrf.mxu1 }
 0x5f8   :  { %v715_v27 = vadd.f32 %v910_v25, %v714_v26 }
 0x5f9   :  { %v1072_v28 = vpop.f32.mrf.mxu1 }
 0x5fa   :  { %722 = vrot.lane.b32.xlu0 %v715_v27, %s1171_s0  ;;  %v718_v31 = vmul.f32 1.442695, %v715_v27 }
 0x5fb   :  { %v869_v29 = vpop.f32.mrf.mxu1 }
 0x5fc   :  { %1097 = vpow2.f32 %v718_v31 }
 0x5fd   :  { %v1086_v30 = vpop.f32.mrf.mxu1 }
 0x609   :  { %v1098_v32 = vpop.eup %1097 }
 0x60a   :  { %v720_v33 = vmul.f32 %v1098_v32, %v1216_v14 }
 0x66c   :  { %v723_v34 = vpop.permute.xlu0 %722 }
 0x66d   :  { %v725_v35 = vadd.f32 %v723_v34, %v720_v33 }
 0x66f   :  { %1078 = vmatmul.mubr.msk.f32.vlgmr.msra.gmra.mxu0 %vm46_vm1, %v725_v35 }
 0x72f   :  { %v799_v0 = vpop.f32.mrf.mxu0 }
 0x730   :  { %v870_v37 = vadd.f32 %v869_v29, %v799_v0 }
 0x731   :  { %v1079_v38 = vpop.f32.mrf.mxu0 }
 0x732   :  { %v878_v39 = vadd.f32 %v914_v36, %v870_v37 }
 0x734   :  { %879 = vst.msk [vmem:[#allocation7] sm:$0xff] %vm46_vm1, %v878_v39 }
 0x735   :  { %1150 = shalt.err (!%p1147_p0)
}
 0x736   :  { %889 = dma.vmem_to_hbm [thread:$0]  %s887_s21, 128, %s1283_s2, [#allocation4]  }
 0x737   :  { %1163 = dma.done.wait [#allocation4], 128  }
 0x738   :  { %1164 = vsyncadd [#allocation4], 4294967168 }
 0x739   :  { %893 = vsyncpa [#allocation3], 1 }
 0x73a   :  { %894 = vsyncpa [#allocation6], 1 }
 0x73b   :  { %895 = vsyncpa [#allocation4], 1 }

</bundles_post_ra>
